<compile_context>
chip_gen: v7x
topology: tpu7x:2x2x1
jax: 0.10.0
libtpu: 0.0.40
codegen_flags: <defaults>
</compile_context>

<pallas_src>
import functools
import math

import jax
import jax.numpy as jnp
from jax import lax
from jax.experimental import pallas as pl
from jax.experimental.pallas import tpu as pltpu


def _gmlp_kernel(x_ref, w1_ref, b1_ref, w2_ref, b2_ref, o_ref, *, hidden):
    # x_ref:  (1, in_f, thw)      pixel tile, channels on sublanes, pixels on lanes
    # w1_ref: (2*hidden, in_f)    fused fc1 weight (PyTorch layout, no transpose)
    # b1_ref: (2*hidden, 1)       fc1 bias (broadcast along lanes)
    # w2_ref: (out_f, hidden)     fc2 weight (PyTorch layout)
    # b2_ref: (out_f, 1)          fc2 bias
    # o_ref:  (1, out_f, thw)     lane-dense output tile
    x = x_ref[0]                                            # (in_f, thw)

    # Fused fc1: one MXU pass producing both chunks; f32 accumulation.
    y = jnp.dot(w1_ref[...], x, preferred_element_type=jnp.float32) + b1_ref[...]
    hx = y[:hidden, :]                                      # x-branch  (chunk 0)
    hz = y[hidden:, :]                                      # z-branch  (chunk 1)

    # Exact (erf-based) GELU, matching torch.nn.GELU() default.
    gelu_z = 0.5 * hz * (1.0 + lax.erf(hz * (1.0 / math.sqrt(2.0))))
    h = hx * gelu_z                                         # (hidden, thw), f32

    # fc2 (cast gated activations to the weight dtype so bf16 weights hit the
    # bf16 MXU path; f32 accumulation either way).
    out = jnp.dot(w2_ref[...], h.astype(w2_ref.dtype),
                  preferred_element_type=jnp.float32) + b2_ref[...]
    o_ref[0] = out.astype(o_ref.dtype)


def _pick_spatial_tile(hw, max_tile=1024):
    """Largest lane-dense tile of the flattened spatial dim H*W.

    A block dim is legal if it is a multiple of 128 or equals the full dim, so:
      * hw <= max_tile            -> take the whole spatial extent,
      * else                      -> largest multiple of 128 <= max_tile dividing hw,
      * no such divisor           -> fall back to the full extent.
    """
    if hw <= max_tile:
        return hw
    t = (max_tile // 128) * 128
    while t >= 128:
        if hw % t == 0:
            return t
        t -= 128
    # TODO(synk): pad/mask a ragged spatial tail instead of loading the full row.
    return hw


def gmlp_pallas(x_nchw, params, *, max_spatial_tile=1024, matmul_dtype=None):
    """gMlp forward. x_nchw: (B, C_in, H, W).

    matmul_dtype: optional (e.g. jnp.bfloat16) to feed the MXU at bf16 rate
    with f32 accumulation; None keeps the input dtype (exact f32 path).
    """
    w1, b1, w2, b2 = params["w1"], params["b1"], params["w2"], params["b2"]
    two_hidden, in_f = w1.shape
    hidden = two_hidden // 2
    out_f = w2.shape[0]

    B, C, H, W = x_nchw.shape
    assert C == in_f
    hw = H * W
    thw = _pick_spatial_tile(hw, max_spatial_tile)

    # Free reshapes only -- no HBM transpose round trips.
    x_flat = x_nchw.reshape(B, C, hw)
    b1c = b1.reshape(two_hidden, 1).astype(jnp.float32)
    b2c = b2.reshape(out_f, 1).astype(jnp.float32)

    if matmul_dtype is not None:
        x_flat = x_flat.astype(matmul_dtype)
        w1m = w1.astype(matmul_dtype)
        w2m = w2.astype(matmul_dtype)
    else:
        w1m, w2m = w1, w2

    grid = (B, hw // thw)
    kernel = functools.partial(_gmlp_kernel, hidden=hidden)

    out_flat = pl.pallas_call(
        kernel,
        out_shape=jax.ShapeDtypeStruct((B, out_f, hw), x_nchw.dtype),
        grid_spec=pltpu.PrefetchScalarGridSpec(
            num_scalar_prefetch=0,
            grid=grid,
            in_specs=[
                # activations: one batch row, one spatial tile
                pl.BlockSpec((1, in_f, thw), lambda b, t: (b, 0, t)),
                # grid-invariant weights / biases (stay resident in VMEM)
                pl.BlockSpec((two_hidden, in_f), lambda b, t: (0, 0)),
                pl.BlockSpec((two_hidden, 1), lambda b, t: (0, 0)),
                pl.BlockSpec((out_f, hidden), lambda b, t: (0, 0)),
                pl.BlockSpec((out_f, 1), lambda b, t: (0, 0)),
            ],
            out_specs=pl.BlockSpec((1, out_f, thw), lambda b, t: (b, 0, t)),
        ),
        compiler_params=pltpu.CompilerParams(
            # Both grid axes are independent -> megacore sharding on v7x.
            dimension_semantics=("parallel", "parallel")),
    )(x_flat, w1m, b1c, w2m, b2c)

    # (B, out_f, H*W) -> (B, out_f, H, W): free reshape, still NCHW.
    return out_flat.reshape(B, out_f, H, W)


def gmlp_reference(x_nchw, params):
    """Pure-JAX reference mirroring the PyTorch forward (channels_first=True)."""
    w1, b1, w2, b2 = params["w1"], params["b1"], params["w2"], params["b2"]
    hidden = w1.shape[0] // 2
    y = jnp.einsum("bchw,oc->bohw", x_nchw, w1) + b1[None, :, None, None]
    xb, zb = y[:, :hidden], y[:, hidden:]
    gelu_z = 0.5 * zb * (1.0 + lax.erf(zb / math.sqrt(2.0)))
    h = xb * gelu_z
    out = jnp.einsum("bchw,oc->bohw", h, w2) + b2[None, :, None, None]
    return out  # dropout p=0.0 -> identity


def init_params(key, in_features, hidden_features, out_features):
    # Deterministic synthetic params with PyTorch nn.Linear-like shapes:
    #   fc1.weight: (2*hidden, in)   fc1.bias: (2*hidden,)
    #   fc2.weight: (out, hidden)    fc2.bias: (out,)
    k1, k2, k3, k4 = jax.random.split(key, 4)
    s1 = 1.0 / math.sqrt(in_features)
    s2 = 1.0 / math.sqrt(hidden_features)
    return {
        "w1": jax.random.uniform(k1, (2 * hidden_features, in_features),
                                 jnp.float32, -s1, s1),
        "b1": jax.random.uniform(k2, (2 * hidden_features,), jnp.float32, -s1, s1),
        "w2": jax.random.uniform(k3, (out_features, hidden_features),
                                 jnp.float32, -s2, s2),
        "b2": jax.random.uniform(k4, (out_features,), jnp.float32, -s2, s2),
    }


if __name__ == "__main__":
    key = jax.random.PRNGKey(0)
    kx, kp = jax.random.split(key)

    B, C_in, H, W = 2, 4, 16, 16
    hidden, C_out = 32, 4

    x = jax.random.normal(kx, (B, C_in, H, W), jnp.float32)
    params = init_params(kp, C_in, hidden, C_out)

    out = gmlp_pallas(x, params)
    out = jax.block_until_ready(out)

    ref = gmlp_reference(x, params)
    ref = jax.block_until_ready(ref)

    assert out.shape == (B, C_out, H, W)
    assert jnp.allclose(out, ref, atol=1e-4, rtol=1e-4), (
        float(jnp.max(jnp.abs(out - ref))))

    print("KERNEL_OK")
</pallas_src>

<mosaic_0001>
module attributes {stable_mosaic.version = 11 : i64} {
  func.func @_gmlp_kernel(%arg0: i32, %arg1: i32, %arg2: memref<1x4x256xf32, #tpu.memory_space<vmem>>, %arg3: memref<64x4xf32, #tpu.memory_space<vmem>>, %arg4: memref<64x1xf32, #tpu.memory_space<vmem>>, %arg5: memref<4x32xf32, #tpu.memory_space<vmem>>, %arg6: memref<4x1xf32, #tpu.memory_space<vmem>>, %arg7: memref<1x4x256xf32, #tpu.memory_space<vmem>>) attributes {dimension_semantics = [#tpu.dimension_semantics<parallel>, #tpu.dimension_semantics<parallel>], iteration_bounds = array<i64: 2, 1>, scalar_prefetch = 0 : i64, scratch_operands = 0 : i64, tpu.core_type = #tpu.core_type<tc>, window_params = [{transform_indices = @transform_0, window_bounds = array<i64: 1, 4, 256>}, {pipeline_mode = #tpu.pipeline_mode<synchronous>, transform_indices = @transform_1, window_bounds = array<i64: 64, 4>}, {pipeline_mode = #tpu.pipeline_mode<synchronous>, transform_indices = @transform_2, window_bounds = array<i64: 64, 1>}, {pipeline_mode = #tpu.pipeline_mode<synchronous>, transform_indices = @transform_3, window_bounds = array<i64: 4, 32>}, {pipeline_mode = #tpu.pipeline_mode<synchronous>, transform_indices = @transform_4, window_bounds = array<i64: 4, 1>}, {transform_indices = @transform_5, window_bounds = array<i64: 1, 4, 256>}]} {
    %c0 = arith.constant 0 : index
    %c0_0 = arith.constant 0 : index
    %c0_1 = arith.constant 0 : index
    %0 = vector.load %arg2[%c0, %c0_0, %c0_1] : memref<1x4x256xf32, #tpu.memory_space<vmem>>, vector<1x4x256xf32>
    %1 = vector.shape_cast %0 : vector<1x4x256xf32> to vector<4x256xf32>
    %c0_2 = arith.constant 0 : index
    %c0_3 = arith.constant 0 : index
    %2 = vector.load %arg3[%c0_2, %c0_3] : memref<64x4xf32, #tpu.memory_space<vmem>>, vector<64x4xf32>
    %cst = arith.constant dense<0.000000e+00> : vector<64x256xf32>
    %3 = tpu.matmul %2, %1, %cst {dimension_numbers = #tpu.dot_dimension_numbers<[1], [0], [0], [1], [0, 0, 1, 1], [], []>} : vector<64x4xf32>, vector<4x256xf32>, vector<64x256xf32> -> vector<64x256xf32>
    %c0_4 = arith.constant 0 : index
    %c0_5 = arith.constant 0 : index
    %4 = vector.load %arg4[%c0_4, %c0_5] : memref<64x1xf32, #tpu.memory_space<vmem>>, vector<64x1xf32>
    %5 = vector.broadcast %4 : vector<64x1xf32> to vector<64x256xf32>
    %6 = arith.addf %3, %5 : vector<64x256xf32>
    %7 = vector.extract_strided_slice %6 {offsets = [0, 0], sizes = [32, 256], strides = [1, 1]} : vector<64x256xf32> to vector<32x256xf32>
    %8 = vector.extract_strided_slice %6 {offsets = [32, 0], sizes = [32, 256], strides = [1, 1]} : vector<64x256xf32> to vector<32x256xf32>
    %cst_6 = arith.constant 5.000000e-01 : f32
    %9 = vector.broadcast %cst_6 : f32 to vector<32x256xf32>
    %10 = arith.mulf %9, %8 : vector<32x256xf32>
    %cst_7 = arith.constant 0.707106769 : f32
    %11 = vector.broadcast %cst_7 : f32 to vector<32x256xf32>
    %12 = arith.mulf %8, %11 : vector<32x256xf32>
    %13 = math.erf %12 : vector<32x256xf32>
    %cst_8 = arith.constant 1.000000e+00 : f32
    %14 = vector.broadcast %cst_8 : f32 to vector<32x256xf32>
    %15 = arith.addf %14, %13 : vector<32x256xf32>
    %16 = arith.mulf %10, %15 : vector<32x256xf32>
    %17 = arith.mulf %7, %16 : vector<32x256xf32>
    %c0_9 = arith.constant 0 : index
    %c0_10 = arith.constant 0 : index
    %18 = vector.load %arg5[%c0_9, %c0_10] : memref<4x32xf32, #tpu.memory_space<vmem>>, vector<4x32xf32>
    %cst_11 = arith.constant dense<0.000000e+00> : vector<4x256xf32>
    %19 = tpu.matmul %18, %17, %cst_11 {dimension_numbers = #tpu.dot_dimension_numbers<[1], [0], [0], [1], [0, 0, 1, 1], [], []>} : vector<4x32xf32>, vector<32x256xf32>, vector<4x256xf32> -> vector<4x256xf32>
    %c0_12 = arith.constant 0 : index
    %c0_13 = arith.constant 0 : index
    %20 = vector.load %arg6[%c0_12, %c0_13] : memref<4x1xf32, #tpu.memory_space<vmem>>, vector<4x1xf32>
    %21 = vector.broadcast %20 : vector<4x1xf32> to vector<4x256xf32>
    %22 = arith.addf %19, %21 : vector<4x256xf32>
    %c0_14 = arith.constant 0 : index
    %c0_15 = arith.constant 0 : index
    %c0_16 = arith.constant 0 : index
    %23 = vector.load %arg7[%c0_14, %c0_15, %c0_16] : memref<1x4x256xf32, #tpu.memory_space<vmem>>, vector<1x4x256xf32>
    %24 = vector.shape_cast %23 : vector<1x4x256xf32> to vector<4x256xf32>
    %25 = vector.shape_cast %22 : vector<4x256xf32> to vector<1x4x256xf32>
    tpu.vector_store %arg7[%c0_14, %c0_15, %c0_16], %25 {strides = array<i32>} : memref<1x4x256xf32, #tpu.memory_space<vmem>>, vector<1x4x256xf32>,
    return
  }
  func.func @transform_0(%arg0: i32, %arg1: i32) -> (i32, i32, i32) {
    %c0_i32 = arith.constant 0 : i32
    %c0_i32_0 = arith.constant 0 : i32
    return %arg0, %c0_i32, %arg1 : i32, i32, i32
  }
  func.func @transform_1(%arg0: i32, %arg1: i32) -> (i32, i32) {
    %c0_i32 = arith.constant 0 : i32
    %c0_i32_0 = arith.constant 0 : i32
    %c0_i32_1 = arith.constant 0 : i32
    return %c0_i32, %c0_i32_0 : i32, i32
  }
  func.func @transform_2(%arg0: i32, %arg1: i32) -> (i32, i32) {
    %c0_i32 = arith.constant 0 : i32
    %c0_i32_0 = arith.constant 0 : i32
    %c0_i32_1 = arith.constant 0 : i32
    return %c0_i32, %c0_i32_0 : i32, i32
  }
  func.func @transform_3(%arg0: i32, %arg1: i32) -> (i32, i32) {
    %c0_i32 = arith.constant 0 : i32
    %c0_i32_0 = arith.constant 0 : i32
    %c0_i32_1 = arith.constant 0 : i32
    return %c0_i32, %c0_i32_0 : i32, i32
  }
  func.func @transform_4(%arg0: i32, %arg1: i32) -> (i32, i32) {
    %c0_i32 = arith.constant 0 : i32
    %c0_i32_0 = arith.constant 0 : i32
    %c0_i32_1 = arith.constant 0 : i32
    return %c0_i32, %c0_i32_0 : i32, i32
  }
  func.func @transform_5(%arg0: i32, %arg1: i32) -> (i32, i32, i32) {
    %c0_i32 = arith.constant 0 : i32
    %c0_i32_0 = arith.constant 0 : i32
    return %arg0, %c0_i32, %arg1 : i32, i32, i32
  }
}

</mosaic_0001>

<bundles_post_ra>
// kernel: tpu_custom_call.1
= control target key start
LH: loop header
LB: loop body
LE: loop exit
PB: predicated region body
PF: predicated region fallthrough
CT: control target
= control target key end

     0   :  { %10 = vsyncpa [#allocation3], 0  ;;  %s1089_s0 = inlined_call_operand.vmem [shape: f32[2,4,256], index: 0, kind: input, shape index: {}]   ;;  %s1090_s1 = inlined_call_operand.vmem [shape: f32[64,4], index: 1, kind: input, shape index: {}]   ;;  %s1091_s2 = inlined_call_operand.vmem [shape: f32[64,1], index: 2, kind: input, shape index: {}]   ;;  %s1092_s3 = inlined_call_operand.vmem [shape: f32[4,32], index: 3, kind: input, shape index: {}]   ;;  %s1093_s4 = inlined_call_operand.vmem [shape: f32[4,1], index: 4, kind: input, shape index: {}]   ;;  %s1094_s5 = inlined_call_operand.hbm [shape: f32[2,4,256], index: 5, kind: output, shape index: {}]  }
   0x1   :  { %12 = vsyncpa [#allocation3 + $0x1], 0  ;;  %s909_s18 = smov 0   ;;  %s911_s19 = smov 0  }
   0x2   :  { %s913_s20 = smov 0   ;;  %s915_s21 = smov 0  }
   0x3   :  { %s917_s22 = smov 0   ;;  %s919_s23 = smov 0  }
   0x4 LB: > { %s684_s24 = sadd.s32 4294967295, %s874_s23   ;;  %s685_s25 = sadd.s32 4294967294, %s874_s23   ;;  %s874_s23 = sphi %s919_s23, %s18_s23   ;;  %s870_s22 = sphi %s917_s22, %s1101_s22   ;;  %s866_s21 = sphi %s915_s21, %s1100_s21   ;;  %s862_s20 = sphi %s913_s20, %s1099_s20   ;;  %s858_s19 = sphi %s911_s19, %s1098_s19   ;;  %s854_s18 = sphi %s909_s18, %s1097_s18  }
   0x5   : > { %s30_s26 = sadd.s32 1, %s870_s22  ;;  %s151_s27 = sadd.s32 1, %s862_s20 }
   0x6   : > { %p32_p0 = scmp.ge.s32.totalorder %s30_s26, 2  ;;  %p161_p1 = scmp.ne.s32.totalorder %s862_s20, %s858_s19 }
   0x7   : > { %p162_p2 = scmp.eq.s32.totalorder %s684_s24, 1  ;;  %p167_p3 = scmp.ne.s32.totalorder %s858_s19, %s854_s18 }
   0x8   : > { %s1103_s26 = smov (%p32_p0, %s30_s26), 0  ;;  %p168_p5 = scmp.eq.s32.totalorder %s685_s25, 1 }
   0x9   : > { %p949_p4 = por %p162_p2, %p161_p1  ;;  %s146_s29 = ssub.s32 %s870_s22, %s1103_s26 }
   0xa   : > { %p688_p6 = scmp.ge.s32.totalorder %s874_s23, 1  ;;  %p149_p7 = scmp.eq.s32.totalorder %s146_s29, 0 }
   0xb   : > { %p956_p8 = por %p168_p5, %p167_p3  ;;  %p211_p9 = scmp.lt.s32.totalorder %s874_s23, 3 }
   0xc   : > { %s962_s6 = scalar_select %p149_p7, %s862_s20, %s151_s27  }
   0xd   : > { %p212_p10 = pnand %p688_p6, %p211_p9 }
   0xe   : > { %p244_p11 = scmp.lt.s32.totalorder (!%p212_p10), %s866_s21, 1  ;;  %v876_v0 = vmov (!%p212_p10), 0.0   ;;  %v877_v1 = vmov (!%p212_p10), 0   ;;  %v267_v2 = vld [vmem:[%s1091_s2 + $0x20] sm:$0xff] (!%p212_p10)  ;;  %v269_v3 = vld [vmem:[%s1091_s2 + $0x30] sm:$0xff] (!%p212_p10)  ;;  %v268_v4 = vld [vmem:[%s1091_s2 + $0x28] sm:$0xff] (!%p212_p10) }
   0xf   : > { %215 = sbr.rel (%p212_p10) target bundleno = 522 (0x20a), region = 40  ;;  %407 = vmatprep.mubr.f32.mxu0 (!%p212_p10), %v876_v0  ;;  %437 = vmatprep.mubr.f32.mxu1 (!%p212_p10), %v876_v0  ;;  %v270_v5 = vld [vmem:[%s1091_s2 + $0x38] sm:$0xff] (!%p212_p10)  ;;  %vm338_vm0 = vcmask (!%p212_p10), 1043456   ;;  %v255_v8 = vld [vmem:[%s1090_s1] sm:$0xff] (!%p212_p10)  ;;  %vm313_vm1 = vcmask (!%p212_p10), 31744   ;;  %v260_v9 = vld [vmem:[%s1090_s1 + $0x28] sm:$0xff] (!%p212_p10) }
  0x10   : > { %777 = vset.pattern.permute.xlu0 (!%p212_p10), %v877_v1  ;;  %778 = vset.pattern.permute.xlu1 (!%p212_p10), %v877_v1  ;;  %v263_v10 = vld [vmem:[%s1091_s2] sm:$0xff] (!%p212_p10)  ;;  %v264_v11 = vld [vmem:[%s1091_s2 + $0x8] sm:$0xff] (!%p212_p10)  ;;  %v261_v13 = vld [vmem:[%s1090_s1 + $0x30] sm:$0xff] (!%p212_p10)  ;;  %vm511_vm2 = vcmask (!%p212_p10), 261120   ;;  %s240_s24 = sand.u32 (!%p212_p10), 1, %s858_s19   ;;  %s709_s27 = sshll.u32 (!%p212_p10), %s866_s21, 7 }
  0x11   : > { %293 = vperm.xlu0 (!%p212_p10), %777, %v267_v2   ;;  %303 = vperm.xlu1 (!%p212_p10), %778, %v269_v3   ;;  %v256_v12 = vld [vmem:[%s1090_s1 + $0x8] sm:$0xff] (!%p212_p10)  ;;  %v265_v14 = vld [vmem:[%s1091_s2 + $0x10] sm:$0xff] (!%p212_p10)  ;;  %v266_v15 = vld [vmem:[%s1091_s2 + $0x18] sm:$0xff] (!%p212_p10)  ;;  %s689_s25 = sshll.u32 (!%p212_p10), %s240_s24, 3  ;;  %s1042_s10 = scalar_lea.hbm (!%p212_p10), %s1094_s5, %s709_s27 }
  0x12   : > { %v257_v16 = vld [vmem:[%s1090_s1 + $0x10] sm:$0xff] (!%p212_p10)  ;;  %v262_v17 = vld [vmem:[%s1090_s1 + $0x38] sm:$0xff] (!%p212_p10)  ;;  %v505_v18 = vld [vmem:[%s1093_s4] sm:$0xf] (!%p212_p10)  ;;  %s242_s29 = scalar_lea.vmem (!%p212_p10), [#allocation2], %s689_s25  ;;  %s592_s11 = scalar_lea.sflag (!%p212_p10), [#allocation3], %s240_s24 }
  0x13   : > { %v258_v19 = vld [vmem:[%s1090_s1 + $0x18] sm:$0xff] (!%p212_p10)  ;;  %v259_v20 = vld [vmem:[%s1090_s1 + $0x20] sm:$0xff] (!%p212_p10) }
  0x15   : > { %298 = vperm.xlu0 (!%p212_p10), %777, %v268_v4   ;;  %308 = vperm.xlu1 (!%p212_p10), %778, %v270_v5  }
  0x16   : > { %s245_s7 = scalar_select %p244_p11, %s866_s21, 1 }
  0x17   : > { %s878_s21 = smov [#allocation2]  }
  0x18   : > { %s708_s12 = sshll.u32 %s245_s7, 3  ;;  %s608_s7 = sshll.u32 %s242_s29, 4  ;;  %s1044_s7 = int_to_ptr.vmem [resolvable:$true] %s608_s7 }
  0x19   : > { %s251_s15 = scalar_lea.vmem %s1089_s0, %s708_s12  ;;  %273 = vperm.xlu0 %777, %v263_v10   ;;  %278 = vperm.xlu1 %778, %v264_v11   ;;  %s796_s12 = scalar_lea.vmem %s1044_s7, 128 }
  0x1a   : > { %v254_v6 = vld [vmem:[%s251_s15] sm:$0xff]  ;;  %p797_p12 = scmp.ne.s32.totalorder %s1044_s7, %s796_s12  ;;  %s800_s13 = sshll.u32 %s878_s21, 4  ;;  %s801_s13 = int_to_ptr.vmem [resolvable:$false] %s800_s13 }
  0x1b   : > { %v312_v7 = vcombine.high %v254_v6, %v254_v6  ;;  %s802_s14 = scalar_lea.vmem %s801_s13, 256  ;;  %p803_p1 = scmp.lt.s32.totalorder %s1044_s7, %s801_s13 }
  0x1c   : > { %p798_p13 = pnand %p797_p12, %p949_p4  ;;  %p804_p2 = scmp.lt.s32.totalorder %s802_s14, %s796_s12 }
  0x1d   : > { %692 = vmatprep.subr.msk.mxu0 %vm338_vm0, %v312_v7  ;;  %718 = vmatprep.subr.msk.mxu1 %vm338_vm0, %v312_v7 }
  0x1e   : > { %693 = vmatpush1.msk.msra.mxu0 %vm338_vm0, %v254_v6  ;;  %719 = vmatpush1.msk.msra.mxu1 %vm338_vm0, %v254_v6  ;;  %p799_p0 = pneg %p798_p13  ;;  %p805_p3 = por %p804_p2, %p803_p1 }
  0x1f   : > { %694 = vmatmul.mubr.msk.f32.vlgmr.msra.gmra.mrb[0].mxu0 %vm313_vm1, %v255_v8  ;;  %699 = vmatmul.mubr.msk.f32.vlgmr.msra.gmra.mrb[0].mxu1 %vm313_vm1, %v260_v9 }
  0x20   : > { %413 = vmatprep.mubr.f32.mxu0 %v876_v0  ;;  %443 = vmatprep.mubr.f32.mxu1 %v876_v0  ;;  %p806_p5 = pnand %p805_p3, %p799_p0 }
  0x21   : > { %283 = vperm.xlu0 %777, %v265_v14   ;;  %288 = vperm.xlu1 %778, %v266_v15  }
  0x23   : > { %695 = vmatmul.mubr.msk.f32.gmra.mrb[2].mxu0 %vm313_vm1, %v256_v12  ;;  %700 = vmatmul.mubr.msk.f32.gmra.mrb[2].mxu1 %vm313_vm1, %v261_v13 }
  0x24   : > { %419 = vmatprep.mubr.f32.mxu0 %v876_v0  ;;  %449 = vmatprep.mubr.f32.mxu1 %v876_v0 }
  0x25   : > { %508 = vperm.xlu0 %777, %v505_v18  }
  0x27   : > { %696 = vmatmul.mubr.msk.f32.gmra.mrb[4].mxu0 %vm313_vm1, %v257_v16  ;;  %701 = vmatmul.mubr.msk.f32.gmra.mrb[4].mxu1 %vm313_vm1, %v262_v17 }
  0x28   : > { %425 = vmatprep.mubr.f32.mxu0 %v876_v0  ;;  %579 = vmatprep.mubr.f32.mxu1 %v876_v0 }
  0x2b   : > { %697 = vmatmul.mubr.msk.f32.gmra.mrb[6].mxu0 %vm313_vm1, %v258_v19 }
  0x2c   : > { %431 = vmatprep.mubr.f32.mxu0 %v876_v0 }
  0x2f   : > { %698 = vmatmul.mubr.msk.f32.gmra.mrb[8].mxu0 %vm313_vm1, %v259_v20 }
  0x90   : > { %v294_v21 = vpop.permute.xlu0 %293  ;;  %v304_v22 = vpop.permute.xlu1 %303 }
  0x94   : > { %v299_v23 = vpop.permute.xlu0 %298  ;;  %v309_v38 = vpop.permute.xlu1 %308 }
  0x98   : > { %v274_v53 = vpop.permute.xlu0 %273  ;;  %v279_v54 = vpop.permute.xlu1 %278 }
  0xa0   : > { %v284_v5 = vpop.permute.xlu0 %283  ;;  %v289_v19 = vpop.permute.xlu1 %288 }
  0xf2   : > { %v1028_v24 = vpop.f32.mrb[0].mxu0  ;;  %v439_v25 = vpop.f32.mrb[0].mxu1 }
  0xf3   : > { %v440_v26 = vadd.f32 %v439_v25, %v299_v23  ;;  %v1030_v27 = vpop.f32.mrb[1].mxu0  ;;  %v441_v28 = vpop.f32.mrb[1].mxu1 }
  0xf4   : > { %v442_v29 = vadd.f32 %v441_v28, %v299_v23 }
  0xf5   : > { %v466_v30 = vmul.f32 0.70710677, %v440_v26  ;;  %v458_v51 = vmul.f32 0.5, %v440_v26 }
  0xf6   : > { %v467_v31 = vmul.f32 0.70710677, %v442_v29  ;;  %v415_v32 = vpop.f32.mrb[2].mxu0  ;;  %v445_v33 = vpop.f32.mrb[2].mxu1  ;;  %v459_v58 = vmul.f32 0.5, %v442_v29 }
  0xf7   : > { %780 = verf.f32 %v466_v30  ;;  %v446_v34 = vadd.f32 %v445_v33, %v304_v22  ;;  %v417_v35 = vpop.f32.mrb[3].mxu0  ;;  %v447_v36 = vpop.f32.mrb[3].mxu1  ;;  %v416_v62 = vadd.f32 %v415_v32, %v279_v54 }
  0xf8   : > { %782 = verf.f32 %v467_v31  ;;  %v448_v37 = vadd.f32 %v447_v36, %v304_v22  ;;  %v418_v3 = vadd.f32 %v417_v35, %v279_v54 }
  0xf9   : > { %v468_v39 = vmul.f32 0.70710677, %v446_v34  ;;  %v460_v0 = vmul.f32 0.5, %v446_v34 }
  0xfa   : > { %v469_v40 = vmul.f32 0.70710677, %v448_v37  ;;  %v421_v41 = vpop.f32.mrb[4].mxu0  ;;  %v451_v42 = vpop.f32.mrb[4].mxu1  ;;  %v461_v12 = vmul.f32 0.5, %v448_v37 }
  0xfb   : > { %784 = verf.f32 %v468_v39  ;;  %v452_v43 = vadd.f32 %v451_v42, %v309_v38  ;;  %v423_v44 = vpop.f32.mrb[5].mxu0  ;;  %v453_v45 = vpop.f32.mrb[5].mxu1  ;;  %v422_v14 = vadd.f32 %v421_v41, %v284_v5 }
  0xfc   : > { %786 = verf.f32 %v469_v40  ;;  %v454_v46 = vadd.f32 %v453_v45, %v309_v38  ;;  %v424_v17 = vadd.f32 %v423_v44, %v284_v5  ;;  %v412_v45 = vadd.f32 %v1030_v27, %v274_v53 }
  0xfd   : > { %v470_v47 = vmul.f32 0.70710677, %v452_v43  ;;  %v462_v22 = vmul.f32 0.5, %v452_v43  ;;  %v410_v43 = vadd.f32 %v1028_v24, %v274_v53  ;;  %v509_v24 = vpop.permute.xlu0 %508 }
  0xfe   : > { %v471_v48 = vmul.f32 0.70710677, %v454_v46  ;;  %v427_v49 = vpop.f32.mrb[6].mxu0  ;;  %v463_v26 = vmul.f32 0.5, %v454_v46 }
  0xff   : > { %788 = verf.f32 %v470_v47  ;;  %v429_v50 = vpop.f32.mrb[7].mxu0  ;;  %v428_v29 = vadd.f32 %v427_v49, %v289_v19 }
 0x100   : > { %790 = verf.f32 %v471_v48  ;;  %v430_v31 = vadd.f32 %v429_v50, %v289_v19 }
 0x101   : > { %v781_v52 = vpop.eup %780 }
 0x102   : > { %v783_v55 = vpop.eup %782  ;;  %v482_v56 = vadd.f32 1.0, %v781_v52  ;;  %v433_v57 = vpop.f32.mrb[8].mxu0 }
 0x103   : > { %v483_v59 = vadd.f32 1.0, %v783_v55  ;;  %v434_v60 = vadd.f32 %v433_v57, %v294_v21  ;;  %v435_v61 = vpop.f32.mrb[9].mxu0 }
 0x104   : > { %v490_v63 = vmul.f32 %v482_v56, %v458_v51  ;;  %v436_v1 = vadd.f32 %v435_v61, %v294_v21  ;;  %v504_v51 = vld [vmem:[%s1092_s3] sm:$0xf] }
 0x105   : > { %v785_v2 = vpop.eup %784  ;;  %v491_v4 = vmul.f32 %v483_v59, %v459_v58  ;;  %v464_v6 = vmul.f32 0.70710677, %v434_v60  ;;  %v456_v39 = vmul.f32 0.5, %v434_v60 }
 0x106   : > { %v787_v7 = vpop.eup %786  ;;  %v498_v8 = vmul.f32 %v490_v63, %v416_v62  ;;  %v484_v9 = vadd.f32 1.0, %v785_v2  ;;  %v465_v10 = vmul.f32 0.70710677, %v436_v1  ;;  %v457_v41 = vmul.f32 0.5, %v436_v1 }
 0x107   : > { %v499_v11 = vmul.f32 %v491_v4, %v418_v3  ;;  %v485_v13 = vadd.f32 1.0, %v787_v7  ;;  %792 = verf.f32 %v464_v6 }
 0x108   : > { %v492_v15 = vmul.f32 %v484_v9, %v460_v0  ;;  %794 = verf.f32 %v465_v10 }
 0x109   : > { %v789_v16 = vpop.eup %788  ;;  %v493_v18 = vmul.f32 %v485_v13, %v461_v12 }
 0x10a   : > { %v791_v20 = vpop.eup %790  ;;  %v500_v21 = vmul.f32 %v492_v15, %v422_v14  ;;  %v486_v23 = vadd.f32 1.0, %v789_v16 }
 0x10b   : > { %v501_v25 = vmul.f32 %v493_v18, %v424_v17  ;;  %v487_v28 = vadd.f32 1.0, %v791_v20 }
 0x10c   : > { %v494_v30 = vmul.f32 %v486_v23, %v462_v22 }
 0x10d   : > { %v495_v32 = vmul.f32 %v487_v28, %v463_v26 }
 0x10e   : > { %v502_v33 = vmul.f32 %v494_v30, %v428_v29 }
 0x10f   : > { %v503_v34 = vmul.f32 %v495_v32, %v430_v31 }
 0x110   : > { %v716_v35 = vpack.c.bf16 %v502_v33, %v500_v21 }
 0x111   : > { %v793_v36 = vpop.eup %792  ;;  %v714_v37 = vpack.c.bf16 %v503_v34, %v501_v25 }
 0x112   : > { %v795_v38 = vpop.eup %794  ;;  %v480_v40 = vadd.f32 1.0, %v793_v36 }
 0x113   : > { %v481_v42 = vadd.f32 1.0, %v795_v38 }
 0x114   : > { %v488_v44 = vmul.f32 %v480_v40, %v456_v39 }
 0x115   : > { %v489_v46 = vmul.f32 %v481_v42, %v457_v41 }
 0x116   : > { %v496_v47 = vmul.f32 %v488_v44, %v410_v43 }
 0x117   : > { %v497_v48 = vmul.f32 %v489_v46, %v412_v45 }
 0x118   : > { %v712_v49 = vpack.c.bf16 %v498_v8, %v496_v47 }
 0x119   : > { %v710_v50 = vpack.c.bf16 %v499_v11, %v497_v48 }
 0x11b   : > { %711 = vmatprep.subr.bf16.mxu1 %v710_v50 }
 0x11c   : > { %713 = vmatpush1.bf16.msra.mxu1 %v712_v49 }
 0x11d   : > { %715 = vmatprep.subr.bf16.mxu1 %v714_v37 }
 0x120   : > { %717 = vmatpush1.bf16.msra.mxu1 %v716_v35 }
 0x123   : > { %702 = vmatmul.mubr.msk.f32.vlgmr.msra.gmra.mrb[6].mxu1 %vm511_vm2, %v504_v51 }
 0x1f6   : > { %v581_v27 = vpop.f32.mrb[6].mxu1 }
 0x1f7   : > { %v582_v52 = vadd.f32 %v581_v27, %v509_v24  ;;  %v583_v53 = vpop.f32.mrb[7].mxu1 }
 0x1f8   : > { %v584_v54 = vadd.f32 %v583_v53, %v509_v24 }
 0x1fa   : > { %v588_v55 = vcombine.low %v582_v52, %v584_v54 }
 0x1fc   : > { %590 = vst [vmem:[%s242_s29] sm:$0xff] %v588_v55 }
 0x1fd   : > { %809 = shalt.err (!%p806_p5)
}
 0x1fe   : > { %s810_s15 = scalar_lea.hbm %s1042_s10, 128  ;;  %s814_s24 = scalar_lea.hbm %s1094_s5, 256 }
 0x1ff   : > { %p811_p6 = scmp.ne.s32.totalorder %s1042_s10, %s810_s15  ;;  %p815_p10 = scmp.lt.u32.totalorder %s1042_s10, %s1094_s5 }
 0x200   : > { %p816_p11 = scmp.lt.u32.totalorder %s814_s24, %s810_s15  ;;  %p818_p13 = scmp.lt.u32.totalorder %s810_s15, %s1042_s10 }
 0x201   : > { %p812_p7 = pnand %p811_p6, %p949_p4 }
 0x202   : > { %p817_p12 = por %p816_p11, %p815_p10 }
 0x203   : > { %p813_p9 = pneg %p812_p7 }
 0x204   : > { %p819_p0 = por %p818_p13, %p817_p12 }
 0x206   : > { %p820_p1 = pnand %p819_p0, %p813_p9 }
 0x208   : > { %823 = shalt.err (!%p820_p1)
}
 0x209   : > { %720 = dma.vmem_to_hbm [thread:$0]  (%p949_p4), %s1044_s7, 128, %s1042_s10, %s592_s11  }
 0x20a PF: > { %p726_p2 = scmp.ge.s32.totalorder %s874_s23, 2  ;;  %s620_s29 = sand.u32 1, %s854_s18  }
 0x20b   : > { %s621_s8 = scalar_lea.sflag [#allocation3], %s620_s29 }
 0x20c   : > { %p723_p3 = pnand %p726_p2, %p956_p8 }
 0x20e   : > { %849 = dma.done.wait (!%p723_p3), %s621_s8, 128  }
 0x20f   : > { %851 = vsyncadd (!%p723_p3), %s621_s8, 4294967168  ;;  %s18_s23 = sadd.s32 1, %s874_s23   ;;  %s1097_s18 = smov %s858_s19 }
 0x210   : > { %p15_p5 = scmp.ge.s32.totalorder %s18_s23, 4   ;;  %s1098_s19 = smov %s862_s20 }
 0x211   : > { %s1099_s20 = smov %s962_s6  ;;  %s1100_s21 = smov %s870_s22 }
 0x212   : > { %s1101_s22 = smov %s1103_s26  ;;  %17 = sbr.rel (!%p15_p5) target bundleno = 4 (0x4), region = 75 }
 0x219   :  { %626 = vsyncpa [#allocation3], 1 }
 0x21a   :  { %628 = vsyncpa [#allocation3 + $0x1], 1 }

</bundles_post_ra>
